<compile_context>
chip_gen: v5e
topology: v5e:2x2
jax: 0.10.0
libtpu: 0.0.40
codegen_flags: <defaults>
</compile_context>

<pallas_src>
import math
from functools import partial

import jax
import jax.numpy as jnp
from jax import lax
from jax.experimental import pallas as pl
from jax.experimental.pallas import tpu as pltpu

_LANE = 128
_VMEM_LIMIT_BYTES = 48 * 1024 * 1024   # scoped limit handed to Mosaic (< v7x's 64 MiB physical)
_VMEM_BUDGET_BYTES = 32 * 1024 * 1024  # budget used by the Bt heuristic (leaves headroom)
_TARGET_ROWS = 512                     # projected rows (Bt * n_node) per grid step


# --------------------------------------------------------------------------- #
# One-time parameter preparation (NOT per forward call)
# --------------------------------------------------------------------------- #
def prepare_attention_params(wq, wk, wv, wo, *, k_dim, mxu_dtype=jnp.float32):
    """One-time weight packing for the attention kernels.

    * folds the 1/sqrt(k_dim) score scale into wq,
    * packs [wq|wk|wv] (fused self-attention QKV projection) and [wk|wv]
      (fused K/V projection for the k-is-v cross-attention case),
    * zero-pads wo's output dim to a multiple of 128 so the kernel's output
      store is lane-dense (full vst instead of masked vst.msk),
    * pre-casts every weight to the MXU operand dtype (bf16 halves weight DMA
      bytes and removes per-grid-step casts; the v5e/v6e/v7x MXUs are all
      bf16-native — accumulation and softmax/elementwise math stay f32).

    Weights are (in_features, out_features), i.e. transposed vs torch's
    nn.Linear.weight, so the kernels compute x @ W.
    """
    scale = jnp.float32(1.0 / math.sqrt(k_dim))
    wq_s = wq.astype(jnp.float32) * scale
    v_hidden = int(wo.shape[1])
    pad = (-v_hidden) % _LANE
    wo_p = jnp.pad(wo, ((0, 0), (0, pad))) if pad else wo
    return dict(
        wq=wq_s.astype(mxu_dtype),
        wk=wk.astype(mxu_dtype),
        wv=wv.astype(mxu_dtype),
        w_qkv=jnp.concatenate([wq_s, wk, wv], axis=1).astype(mxu_dtype),
        w_kv=jnp.concatenate([wk, wv], axis=1).astype(mxu_dtype),
        wo=wo_p.astype(mxu_dtype),
        v_hidden=v_hidden,
    )


# --------------------------------------------------------------------------- #
# Batch-tile heuristic
# --------------------------------------------------------------------------- #
def _choose_block_b(batch, n_q, n_kv, per_batch_bytes, fixed_bytes):
    """Pick Bt = batch elements per grid step.

    The grid is a serial loop on one TensorCore (v5e/v6e) with ~0.35 us
    (~600 cycles) of pipeline overhead per step, so prefer one big block.
    Split into >= 2 blocks (so v7x's two TensorCores both get work via the
    "parallel" axis) only when each block still carries >= _TARGET_ROWS of
    projected rows.  Bt must divide batch, keep blocks sublane-aligned
    (Bt*N % 8 == 0) unless it spans the full batch, and the estimated VMEM
    footprint must fit the budget (re-derived so choices that fit v5e/v6e's
    128 MiB also fit v7x's 64 MiB).
    """
    def aligned(bt):
        return bt == batch or ((bt * n_q) % 8 == 0 and (bt * n_kv) % 8 == 0)

    def fits(bt):
        return fixed_bytes + bt * per_batch_bytes <= _VMEM_BUDGET_BYTES

    cap = batch
    if batch * n_q >= 2 * _TARGET_ROWS:
        cap = max(1, batch // 2)
    for bt in range(cap, 0, -1):
        if batch % bt == 0 and aligned(bt) and fits(bt):
            return bt
    for bt in range(1, batch + 1):          # VMEM-over-budget fallback
        if batch % bt == 0 and aligned(bt):
            return bt
    return batch


# --------------------------------------------------------------------------- #
# Shared multi-head attention core (traced inside the kernels)
# --------------------------------------------------------------------------- #
def _mha(qp, kp, vp, mask_ref, wo_ref, *, n_head, k_dim, v_dim):
    """qp: (Bt, Nq, H*kd) f32 — already scaled (1/sqrt(kd) folded into wq).
    kp: (Bt, Nk, H*kd) f32, vp: (Bt, Nk, H*vd) f32.
    mask_ref: (Bt, 1, Nk) f32 additive bias ref (0 / -inf) or None.
    wo_ref: (H*vd, out_cols) weight ref, out_cols padded to a lane multiple.
    Returns (Bt*Nq, out_cols) f32.

    Single-batch-dim dot_generals per head (the Mosaic-validated batched
    matmul form); heads are re-merged once so the output projection is a
    single MXU matmul.
    # TODO(synk): collapse the head loop into one dot_general batched over
    # (batch, head) once 2-batch-dim dot_general lowering is verified on
    # Mosaic — the width-k_dim lane slices cost some VALU/XLU relayout work.
    """
    mxu_dtype = wo_ref.dtype
    bt, n_q, _ = qp.shape
    n_kv = kp.shape[1]
    qp = qp.astype(mxu_dtype)
    kp = kp.astype(mxu_dtype)
    vp = vp.astype(mxu_dtype)

    mask_full = None
    if mask_ref is not None:
        # Hoisted once: one broadcast shared by every head (no per-head
        # un-CSE'd broadcast_in_dim).
        mask_full = jnp.broadcast_to(mask_ref[...].reshape(bt, 1, n_kv),
                                     (bt, n_q, n_kv))

    att_heads = []
    for h in range(n_head):
        qh = qp[:, :, h * k_dim:(h + 1) * k_dim]
        kh = kp[:, :, h * k_dim:(h + 1) * k_dim]
        vh = vp[:, :, h * v_dim:(h + 1) * v_dim]

        s = lax.dot_general(qh, kh, (((2,), (2,)), ((0,), (0,))),
                            preferred_element_type=jnp.float32)   # (Bt,Nq,Nk)
        if mask_full is not None:
            s = s + mask_full                                     # -inf where masked
        # Numerically stable softmax; reciprocal on the EUP slot.
        # (A fully-masked row yields NaN, matching torch softmax of all -inf.)
        s = s - jnp.max(s, axis=-1, keepdims=True)
        p = jnp.exp(s)
        p = p * pl.reciprocal(jnp.sum(p, axis=-1, keepdims=True), approx=True)

        att_heads.append(
            lax.dot_general(p.astype(mxu_dtype), vh, (((2,), (1,)), ((0,), (0,))),
                            preferred_element_type=jnp.float32))  # (Bt,Nq,vd)

    # Re-merge heads once -> single output-projection matmul (lane-padded wo).
    att = jnp.concatenate(att_heads, axis=-1).reshape(bt * n_q, n_head * v_dim)
    return jnp.dot(att.astype(mxu_dtype), wo_ref[...],
                   preferred_element_type=jnp.float32)            # (Bt*Nq, out_cols)


# --------------------------------------------------------------------------- #
# Kernels
# --------------------------------------------------------------------------- #
def _self_attn_kernel(*refs, n_head, k_dim, v_dim, n_node, has_mask):
    if has_mask:
        mask_ref, x_ref, wqkv_ref, wo_ref, o_ref = refs
    else:
        x_ref, wqkv_ref, wo_ref, o_ref = refs
        mask_ref = None
    bt = x_ref.shape[0] // n_node
    hkd = n_head * k_dim

    w = wqkv_ref[...]
    # One fused Q/K/V projection: a single MXU matmul with M = Bt*N rows.
    proj = jnp.dot(x_ref[...].astype(w.dtype), w,
                   preferred_element_type=jnp.float32).reshape(bt, n_node, -1)
    out = _mha(proj[:, :, :hkd], proj[:, :, hkd:2 * hkd], proj[:, :, 2 * hkd:],
               mask_ref, wo_ref, n_head=n_head, k_dim=k_dim, v_dim=v_dim)
    o_ref[...] = out.astype(o_ref.dtype)


def _cross_kv_attn_kernel(*refs, n_head, k_dim, v_dim, n_q, n_kv, has_mask):
    if has_mask:
        mask_ref, q_ref, kv_ref, wq_ref, wkv_ref, wo_ref, o_ref = refs
    else:
        q_ref, kv_ref, wq_ref, wkv_ref, wo_ref, o_ref = refs
        mask_ref = None
    bt = q_ref.shape[0] // n_q
    hkd = n_head * k_dim

    def proj(in_ref, w_ref, n):
        w = w_ref[...]
        return jnp.dot(in_ref[...].astype(w.dtype), w,
                       preferred_element_type=jnp.float32).reshape(bt, n, -1)

    qp = proj(q_ref, wq_ref, n_q)
    kvp = proj(kv_ref, wkv_ref, n_kv)        # fused [K|V] projection: one matmul
    out = _mha(qp, kvp[:, :, :hkd], kvp[:, :, hkd:], mask_ref, wo_ref,
               n_head=n_head, k_dim=k_dim, v_dim=v_dim)
    o_ref[...] = out.astype(o_ref.dtype)


def _cross_attn_kernel(*refs, n_head, k_dim, v_dim, n_q, n_kv, has_mask):
    if has_mask:
        mask_ref, q_ref, k_ref, v_ref, wq_ref, wk_ref, wv_ref, wo_ref, o_ref = refs
    else:
        q_ref, k_ref, v_ref, wq_ref, wk_ref, wv_ref, wo_ref, o_ref = refs
        mask_ref = None
    bt = q_ref.shape[0] // n_q

    def proj(in_ref, w_ref, n):
        w = w_ref[...]
        return jnp.dot(in_ref[...].astype(w.dtype), w,
                       preferred_element_type=jnp.float32).reshape(bt, n, -1)

    out = _mha(proj(q_ref, wq_ref, n_q), proj(k_ref, wk_ref, n_kv),
               proj(v_ref, wv_ref, n_kv), mask_ref, wo_ref,
               n_head=n_head, k_dim=k_dim, v_dim=v_dim)
    o_ref[...] = out.astype(o_ref.dtype)


# --------------------------------------------------------------------------- #
# pallas_call builder shared by the three paths
# --------------------------------------------------------------------------- #
def _attention_pallas_call(kernel_fn, acts, mask_bias, weights, *, batch, n_q,
                           n_kv, out_cols, out_dtype, n_head, k_dim, v_dim,
                           block_b):
    """acts = [(arr_2d (batch*rows_per_batch, width), rows_per_batch), ...]."""
    f32 = 4
    # Rough VMEM footprint per batch element: double-buffered activation /
    # mask / output blocks plus the dominant in-kernel f32 temporaries.
    per_batch = (sum(2 * npb * a.shape[1] * a.dtype.itemsize for a, npb in acts)
                 + (2 * n_kv * f32 if mask_bias is not None else 0)
                 + 2 * n_q * out_cols * f32
                 + n_q * sum(w.shape[1] for w in weights[:-1]) * f32
                 + 4 * n_q * n_kv * f32
                 + 2 * n_q * n_head * v_dim * f32)
    fixed = 2 * sum(int(w.size) * w.dtype.itemsize for w in weights)
    bt = block_b if block_b is not None else _choose_block_b(
        batch, n_q, n_kv, per_batch, fixed)
    assert batch % bt == 0, "block_b must divide the batch size"

    in_specs, args = [], []
    if mask_bias is not None:
        in_specs.append(pl.BlockSpec((bt, 1, n_kv), lambda b: (b, 0, 0)))
        args.append(mask_bias)
    for arr, npb in acts:
        in_specs.append(pl.BlockSpec((bt * npb, arr.shape[1]), lambda b: (b, 0)))
        args.append(arr)
    for w in weights:
        # TODO(synk): pipeline_mode=pl.Buffered(1) on these constant-index
        # weight blocks would halve their VMEM footprint (matters on v7x as
        # hidden grows); left at the default here for lowering robustness.
        in_specs.append(pl.BlockSpec(w.shape, lambda b: (0, 0)))
        args.append(w)

    proj_flops = 2 * batch * sum(npb * a.shape[1] * w.shape[1]
                                 for (a, npb), w in zip(acts, weights[:-1]))
    flops = (proj_flops
             + 2 * batch * n_head * n_q * n_kv * (k_dim + v_dim)
             + 2 * batch * n_q * n_head * v_dim * out_cols)
    bytes_accessed = (sum(int(a.size) * a.dtype.itemsize for a, _ in acts)
                      + (int(mask_bias.size) * mask_bias.dtype.itemsize
                         if mask_bias is not None else 0)
                      + sum(int(w.size) * w.dtype.itemsize for w in weights)
                      + batch * n_q * out_cols * jnp.dtype(out_dtype).itemsize)

    return pl.pallas_call(
        kernel_fn,
        out_shape=jax.ShapeDtypeStruct((batch * n_q, out_cols), out_dtype),
        grid=(batch // bt,),
        in_specs=in_specs,
        out_specs=pl.BlockSpec((bt * n_q, out_cols), lambda b: (b, 0)),
        compiler_params=pltpu.CompilerParams(
            dimension_semantics=("parallel",),
            vmem_limit_bytes=_VMEM_LIMIT_BYTES),
        cost_estimate=pl.CostEstimate(
            flops=int(flops),
            transcendentals=int(batch * n_head * n_q * n_kv),
            bytes_accessed=int(bytes_accessed)),
    )(*args)


# --------------------------------------------------------------------------- #
# Public forward pass
# --------------------------------------------------------------------------- #
def attention_forward(q, k=None, v=None, mask=None, *, params, n_head, k_dim,
                      v_dim, block_b=None):
    """Forward pass matching the PyTorch `Attention` module (bias-free Linears).

    q/k/v: (batch, n_node, hidden). `params` comes from
    prepare_attention_params (scale folded into wq, packed/pre-cast weights,
    lane-padded wo). mask: optional (batch, n_node_k) bool/int, True at key
    positions to mask out (masked_fill(-inf) semantics; a fully-masked row
    yields NaN, as in torch).

    Dispatch uses object identity (mirroring the torch defaults): q only ->
    fused-QKV self-attention kernel; k given, v defaulted (v is k) -> fused-KV
    cross kernel; otherwise the general cross kernel. Equal-valued but
    distinct arrays take the (still correct) general path.
    """
    if k is None:
        k = q
    if v is None:
        v = k

    batch, n_q, _ = q.shape
    n_kv = k.shape[1]
    v_hidden = params["v_hidden"]
    out_cols = params["wo"].shape[1]
    out_dtype = q.dtype

    has_mask = mask is not None
    mask_bias = None
    if has_mask:
        mask_bias = jnp.where(jnp.reshape(mask, (batch, 1, n_kv)).astype(bool),
                              jnp.float32(-jnp.inf), jnp.float32(0.0))

    common = dict(batch=batch, n_q=n_q, n_kv=n_kv, out_cols=out_cols,
                  out_dtype=out_dtype, n_head=n_head, k_dim=k_dim, v_dim=v_dim,
                  block_b=block_b)

    if k is q and v is q:
        kernel_fn = partial(_self_attn_kernel, n_head=n_head, k_dim=k_dim,
                            v_dim=v_dim, n_node=n_q, has_mask=has_mask)
        out2 = _attention_pallas_call(
            kernel_fn, [(q.reshape(batch * n_q, -1), n_q)], mask_bias,
            [params["w_qkv"], params["wo"]], **common)
    elif k is v:
        kernel_fn = partial(_cross_kv_attn_kernel, n_head=n_head, k_dim=k_dim,
                            v_dim=v_dim, n_q=n_q, n_kv=n_kv, has_mask=has_mask)
        out2 = _attention_pallas_call(
            kernel_fn,
            [(q.reshape(batch * n_q, -1), n_q),
             (k.reshape(batch * n_kv, -1), n_kv)],
            mask_bias, [params["wq"], params["w_kv"], params["wo"]], **common)
    else:
        kernel_fn = partial(_cross_attn_kernel, n_head=n_head, k_dim=k_dim,
                            v_dim=v_dim, n_q=n_q, n_kv=n_kv, has_mask=has_mask)
        out2 = _attention_pallas_call(
            kernel_fn,
            [(q.reshape(batch * n_q, -1), n_q),
             (k.reshape(batch * n_kv, -1), n_kv),
             (v.reshape(batch * n_kv, -1), n_kv)],
            mask_bias,
            [params["wq"], params["wk"], params["wv"], params["wo"]], **common)

    # Drop the lane padding and restore (batch, n_node, v_hidden).
    return out2[:, :v_hidden].reshape(batch, n_q, v_hidden)


# --------------------------------------------------------------------------- #
# Reference + demo
# --------------------------------------------------------------------------- #
def _init_linear_weight(key, in_features, out_features):
    # Deterministic init mimicking nn.Linear default (uniform +-1/sqrt(in)),
    # stored transposed as (in_features, out_features).
    bound = 1.0 / math.sqrt(in_features)
    return jax.random.uniform(key, (in_features, out_features),
                              dtype=jnp.float32, minval=-bound, maxval=bound)


def _reference(q, k, v, wq, wk, wv, wo, mask, *, n_head, k_dim, v_dim):
    # Pure-JAX reference mirroring the PyTorch module.
    B, Nq, _ = q.shape
    Nk = k.shape[1]
    qs = (q @ wq).reshape(B, Nq, n_head, k_dim).transpose(0, 2, 1, 3)
    ks = (k @ wk).reshape(B, Nk, n_head, k_dim).transpose(0, 2, 1, 3)
    vs = (v @ wv).reshape(B, Nk, n_head, v_dim).transpose(0, 2, 1, 3)
    u = jnp.einsum('bhqd,bhkd->bhqk', qs, ks) / math.sqrt(k_dim)
    if mask is not None:
        u = jnp.where(mask[:, None, None, :].astype(bool), -jnp.inf, u)
    att = jax.nn.softmax(u, axis=-1)
    o = jnp.einsum('bhqk,bhkd->bhqd', att, vs)
    o = o.transpose(0, 2, 1, 3).reshape(B, Nq, n_head * v_dim)
    return o @ wo


if __name__ == "__main__":
    q_hidden_dim = 32     # k_hidden_dim / v_hidden_dim default to this
    k_dim = 8
    v_dim = 8
    n_head = 4
    batch = 2
    n_node = 8

    key = jax.random.PRNGKey(0)
    kq, kk, kv, kwq, kwk, kwv, kwo = jax.random.split(key, 7)

    q_in = jax.random.normal(kq, (batch, n_node, q_hidden_dim), dtype=jnp.float32)
    k_in = jax.random.normal(kk, (batch, n_node, q_hidden_dim), dtype=jnp.float32)
    v_in = jax.random.normal(kv, (batch, n_node, q_hidden_dim), dtype=jnp.float32)
    wq = _init_linear_weight(kwq, q_hidden_dim, k_dim * n_head)
    wk = _init_linear_weight(kwk, q_hidden_dim, k_dim * n_head)
    wv = _init_linear_weight(kwv, q_hidden_dim, v_dim * n_head)
    wo = _init_linear_weight(kwo, v_dim * n_head, q_hidden_dim)
    mask = jnp.zeros((batch, n_node), jnp.int32).at[0, -2:].set(1)

    params_f32 = prepare_attention_params(wq, wk, wv, wo, k_dim=k_dim,
                                          mxu_dtype=jnp.float32)

    # 1) Self-attention (k = v = q defaults -> fused-QKV kernel), no mask.
    out = jax.block_until_ready(attention_forward(
        q_in, params=params_f32, n_head=n_head, k_dim=k_dim, v_dim=v_dim))
    ref = _reference(q_in, q_in, q_in, wq, wk, wv, wo, None,
                     n_head=n_head, k_dim=k_dim, v_dim=v_dim)
    assert out.shape == (batch, n_node, q_hidden_dim)
    assert jnp.allclose(out, ref, atol=5e-3, rtol=5e-3)

    # 2) General cross-attention (distinct q/k/v) with a key mask.
    out = jax.block_until_ready(attention_forward(
        q_in, k_in, v_in, mask=mask, params=params_f32,
        n_head=n_head, k_dim=k_dim, v_dim=v_dim))
    ref = _reference(q_in, k_in, v_in, wq, wk, wv, wo, mask,
                     n_head=n_head, k_dim=k_dim, v_dim=v_dim)
    assert out.shape == (batch, n_node, q_hidden_dim)
    assert jnp.allclose(out, ref, atol=5e-3, rtol=5e-3)

    # 3) Cross-attention with v defaulted to k (k is v -> fused-KV kernel), masked.
    out = jax.block_until_ready(attention_forward(
        q_in, k_in, mask=mask, params=params_f32,
        n_head=n_head, k_dim=k_dim, v_dim=v_dim))
    ref = _reference(q_in, k_in, k_in, wq, wk, wv, wo, mask,
                     n_head=n_head, k_dim=k_dim, v_dim=v_dim)
    assert jnp.allclose(out, ref, atol=5e-3, rtol=5e-3)

    # 4) bf16 MXU operands (recommended on v5e/v6e/v7x), self-attention with mask.
    params_bf16 = prepare_attention_params(wq, wk, wv, wo, k_dim=k_dim,
                                           mxu_dtype=jnp.bfloat16)
    out = jax.block_until_ready(attention_forward(
        q_in, mask=mask, params=params_bf16,
        n_head=n_head, k_dim=k_dim, v_dim=v_dim))
    ref = _reference(q_in, q_in, q_in, wq, wk, wv, wo, mask,
                     n_head=n_head, k_dim=k_dim, v_dim=v_dim)
    assert jnp.allclose(out, ref, atol=3e-2, rtol=3e-2)

    print("KERNEL_OK")
</pallas_src>

<mosaic_0001>
module attributes {stable_mosaic.version = 11 : i64} {
  func.func @_self_attn_kernel(%arg0: i32, %arg1: memref<16x32xf32, #tpu.memory_space<vmem>>, %arg2: memref<32x96xf32, #tpu.memory_space<vmem>>, %arg3: memref<32x128xf32, #tpu.memory_space<vmem>>, %arg4: memref<16x128xf32, #tpu.memory_space<vmem>>) attributes {dimension_semantics = [#tpu.dimension_semantics<parallel>], iteration_bounds = array<i64: 1>, scalar_prefetch = 0 : i64, scratch_operands = 0 : i64, tpu.core_type = #tpu.core_type<tc>, window_params = [{transform_indices = @transform_0, window_bounds = array<i64: 16, 32>}, {pipeline_mode = #tpu.pipeline_mode<synchronous>, transform_indices = @transform_1, window_bounds = array<i64: 32, 96>}, {pipeline_mode = #tpu.pipeline_mode<synchronous>, transform_indices = @transform_2, window_bounds = array<i64: 32, 128>}, {transform_indices = @transform_3, window_bounds = array<i64: 16, 128>}]} {
    %c0 = arith.constant 0 : index
    %c0_0 = arith.constant 0 : index
    %0 = vector.load %arg2[%c0, %c0_0] : memref<32x96xf32, #tpu.memory_space<vmem>>, vector<32x96xf32>
    %c0_1 = arith.constant 0 : index
    %c0_2 = arith.constant 0 : index
    %1 = vector.load %arg1[%c0_1, %c0_2] : memref<16x32xf32, #tpu.memory_space<vmem>>, vector<16x32xf32>
    %cst = arith.constant dense<0.000000e+00> : vector<16x96xf32>
    %2 = tpu.matmul %1, %0, %cst {dimension_numbers = #tpu.dot_dimension_numbers<[1], [0], [0], [1], [0, 0, 1, 1], [], []>} : vector<16x32xf32>, vector<32x96xf32>, vector<16x96xf32> -> vector<16x96xf32>
    %3 = vector.shape_cast %2 : vector<16x96xf32> to vector<2x8x96xf32>
    %4 = vector.extract_strided_slice %3 {offsets = [0, 0, 0], sizes = [2, 8, 32], strides = [1, 1, 1]} : vector<2x8x96xf32> to vector<2x8x32xf32>
    %5 = vector.extract_strided_slice %3 {offsets = [0, 0, 32], sizes = [2, 8, 32], strides = [1, 1, 1]} : vector<2x8x96xf32> to vector<2x8x32xf32>
    %6 = vector.extract_strided_slice %3 {offsets = [0, 0, 64], sizes = [2, 8, 32], strides = [1, 1, 1]} : vector<2x8x96xf32> to vector<2x8x32xf32>
    %7 = vector.extract_strided_slice %4 {offsets = [0, 0, 0], sizes = [2, 8, 8], strides = [1, 1, 1]} : vector<2x8x32xf32> to vector<2x8x8xf32>
    %8 = vector.extract_strided_slice %5 {offsets = [0, 0, 0], sizes = [2, 8, 8], strides = [1, 1, 1]} : vector<2x8x32xf32> to vector<2x8x8xf32>
    %9 = vector.extract_strided_slice %6 {offsets = [0, 0, 0], sizes = [2, 8, 8], strides = [1, 1, 1]} : vector<2x8x32xf32> to vector<2x8x8xf32>
    %cst_3 = arith.constant dense<0.000000e+00> : vector<2x8x8xf32>
    %10 = tpu.matmul %7, %8, %cst_3 {dimension_numbers = #tpu.dot_dimension_numbers<[2], [2], [1], [1], [0, 0, 0, 1, 1, 1], [0], [0]>} : vector<2x8x8xf32>, vector<2x8x8xf32>, vector<2x8x8xf32> -> vector<2x8x8xf32>
    %cst_4 = arith.constant dense<0xFF800000> : vector<2x8xf32>
    %11 = vector.multi_reduction <maximumf>, %10, %cst_4 [2] : vector<2x8x8xf32> to vector<2x8xf32>
    %12 = vector.shape_cast %11 : vector<2x8xf32> to vector<2x8x1xf32>
    %13 = vector.broadcast %12 : vector<2x8x1xf32> to vector<2x8x8xf32>
    %14 = arith.subf %10, %13 : vector<2x8x8xf32>
    %15 = math.exp %14 : vector<2x8x8xf32>
    %cst_5 = arith.constant dense<0.000000e+00> : vector<2x8xf32>
    %16 = vector.multi_reduction <add>, %15, %cst_5 [2] : vector<2x8x8xf32> to vector<2x8xf32>
    %17 = vector.shape_cast %16 : vector<2x8xf32> to vector<2x8x1xf32>
    %18 = tpu.reciprocal %17 {approx = true} : vector<2x8x1xf32> -> vector<2x8x1xf32>
    %19 = vector.broadcast %18 : vector<2x8x1xf32> to vector<2x8x8xf32>
    %20 = arith.mulf %15, %19 : vector<2x8x8xf32>
    %cst_6 = arith.constant dense<0.000000e+00> : vector<2x8x8xf32>
    %21 = tpu.matmul %20, %9, %cst_6 {dimension_numbers = #tpu.dot_dimension_numbers<[2], [1], [1], [2], [0, 0, 0, 1, 1, 2], [0], [0]>} : vector<2x8x8xf32>, vector<2x8x8xf32>, vector<2x8x8xf32> -> vector<2x8x8xf32>
    %22 = vector.extract_strided_slice %4 {offsets = [0, 0, 8], sizes = [2, 8, 8], strides = [1, 1, 1]} : vector<2x8x32xf32> to vector<2x8x8xf32>
    %23 = vector.extract_strided_slice %5 {offsets = [0, 0, 8], sizes = [2, 8, 8], strides = [1, 1, 1]} : vector<2x8x32xf32> to vector<2x8x8xf32>
    %24 = vector.extract_strided_slice %6 {offsets = [0, 0, 8], sizes = [2, 8, 8], strides = [1, 1, 1]} : vector<2x8x32xf32> to vector<2x8x8xf32>
    %cst_7 = arith.constant dense<0.000000e+00> : vector<2x8x8xf32>
    %25 = tpu.matmul %22, %23, %cst_7 {dimension_numbers = #tpu.dot_dimension_numbers<[2], [2], [1], [1], [0, 0, 0, 1, 1, 1], [0], [0]>} : vector<2x8x8xf32>, vector<2x8x8xf32>, vector<2x8x8xf32> -> vector<2x8x8xf32>
    %cst_8 = arith.constant dense<0xFF800000> : vector<2x8xf32>
    %26 = vector.multi_reduction <maximumf>, %25, %cst_8 [2] : vector<2x8x8xf32> to vector<2x8xf32>
    %27 = vector.shape_cast %26 : vector<2x8xf32> to vector<2x8x1xf32>
    %28 = vector.broadcast %27 : vector<2x8x1xf32> to vector<2x8x8xf32>
    %29 = arith.subf %25, %28 : vector<2x8x8xf32>
    %30 = math.exp %29 : vector<2x8x8xf32>
    %cst_9 = arith.constant dense<0.000000e+00> : vector<2x8xf32>
    %31 = vector.multi_reduction <add>, %30, %cst_9 [2] : vector<2x8x8xf32> to vector<2x8xf32>
    %32 = vector.shape_cast %31 : vector<2x8xf32> to vector<2x8x1xf32>
    %33 = tpu.reciprocal %32 {approx = true} : vector<2x8x1xf32> -> vector<2x8x1xf32>
    %34 = vector.broadcast %33 : vector<2x8x1xf32> to vector<2x8x8xf32>
    %35 = arith.mulf %30, %34 : vector<2x8x8xf32>
    %cst_10 = arith.constant dense<0.000000e+00> : vector<2x8x8xf32>
    %36 = tpu.matmul %35, %24, %cst_10 {dimension_numbers = #tpu.dot_dimension_numbers<[2], [1], [1], [2], [0, 0, 0, 1, 1, 2], [0], [0]>} : vector<2x8x8xf32>, vector<2x8x8xf32>, vector<2x8x8xf32> -> vector<2x8x8xf32>
    %37 = vector.extract_strided_slice %4 {offsets = [0, 0, 16], sizes = [2, 8, 8], strides = [1, 1, 1]} : vector<2x8x32xf32> to vector<2x8x8xf32>
    %38 = vector.extract_strided_slice %5 {offsets = [0, 0, 16], sizes = [2, 8, 8], strides = [1, 1, 1]} : vector<2x8x32xf32> to vector<2x8x8xf32>
    %39 = vector.extract_strided_slice %6 {offsets = [0, 0, 16], sizes = [2, 8, 8], strides = [1, 1, 1]} : vector<2x8x32xf32> to vector<2x8x8xf32>
    %cst_11 = arith.constant dense<0.000000e+00> : vector<2x8x8xf32>
    %40 = tpu.matmul %37, %38, %cst_11 {dimension_numbers = #tpu.dot_dimension_numbers<[2], [2], [1], [1], [0, 0, 0, 1, 1, 1], [0], [0]>} : vector<2x8x8xf32>, vector<2x8x8xf32>, vector<2x8x8xf32> -> vector<2x8x8xf32>
    %cst_12 = arith.constant dense<0xFF800000> : vector<2x8xf32>
    %41 = vector.multi_reduction <maximumf>, %40, %cst_12 [2] : vector<2x8x8xf32> to vector<2x8xf32>
    %42 = vector.shape_cast %41 : vector<2x8xf32> to vector<2x8x1xf32>
    %43 = vector.broadcast %42 : vector<2x8x1xf32> to vector<2x8x8xf32>
    %44 = arith.subf %40, %43 : vector<2x8x8xf32>
    %45 = math.exp %44 : vector<2x8x8xf32>
    %cst_13 = arith.constant dense<0.000000e+00> : vector<2x8xf32>
    %46 = vector.multi_reduction <add>, %45, %cst_13 [2] : vector<2x8x8xf32> to vector<2x8xf32>
    %47 = vector.shape_cast %46 : vector<2x8xf32> to vector<2x8x1xf32>
    %48 = tpu.reciprocal %47 {approx = true} : vector<2x8x1xf32> -> vector<2x8x1xf32>
    %49 = vector.broadcast %48 : vector<2x8x1xf32> to vector<2x8x8xf32>
    %50 = arith.mulf %45, %49 : vector<2x8x8xf32>
    %cst_14 = arith.constant dense<0.000000e+00> : vector<2x8x8xf32>
    %51 = tpu.matmul %50, %39, %cst_14 {dimension_numbers = #tpu.dot_dimension_numbers<[2], [1], [1], [2], [0, 0, 0, 1, 1, 2], [0], [0]>} : vector<2x8x8xf32>, vector<2x8x8xf32>, vector<2x8x8xf32> -> vector<2x8x8xf32>
    %52 = vector.extract_strided_slice %4 {offsets = [0, 0, 24], sizes = [2, 8, 8], strides = [1, 1, 1]} : vector<2x8x32xf32> to vector<2x8x8xf32>
    %53 = vector.extract_strided_slice %5 {offsets = [0, 0, 24], sizes = [2, 8, 8], strides = [1, 1, 1]} : vector<2x8x32xf32> to vector<2x8x8xf32>
    %54 = vector.extract_strided_slice %6 {offsets = [0, 0, 24], sizes = [2, 8, 8], strides = [1, 1, 1]} : vector<2x8x32xf32> to vector<2x8x8xf32>
    %cst_15 = arith.constant dense<0.000000e+00> : vector<2x8x8xf32>
    %55 = tpu.matmul %52, %53, %cst_15 {dimension_numbers = #tpu.dot_dimension_numbers<[2], [2], [1], [1], [0, 0, 0, 1, 1, 1], [0], [0]>} : vector<2x8x8xf32>, vector<2x8x8xf32>, vector<2x8x8xf32> -> vector<2x8x8xf32>
    %cst_16 = arith.constant dense<0xFF800000> : vector<2x8xf32>
    %56 = vector.multi_reduction <maximumf>, %55, %cst_16 [2] : vector<2x8x8xf32> to vector<2x8xf32>
    %57 = vector.shape_cast %56 : vector<2x8xf32> to vector<2x8x1xf32>
    %58 = vector.broadcast %57 : vector<2x8x1xf32> to vector<2x8x8xf32>
    %59 = arith.subf %55, %58 : vector<2x8x8xf32>
    %60 = math.exp %59 : vector<2x8x8xf32>
    %cst_17 = arith.constant dense<0.000000e+00> : vector<2x8xf32>
    %61 = vector.multi_reduction <add>, %60, %cst_17 [2] : vector<2x8x8xf32> to vector<2x8xf32>
    %62 = vector.shape_cast %61 : vector<2x8xf32> to vector<2x8x1xf32>
    %63 = tpu.reciprocal %62 {approx = true} : vector<2x8x1xf32> -> vector<2x8x1xf32>
    %64 = vector.broadcast %63 : vector<2x8x1xf32> to vector<2x8x8xf32>
    %65 = arith.mulf %60, %64 : vector<2x8x8xf32>
    %cst_18 = arith.constant dense<0.000000e+00> : vector<2x8x8xf32>
    %66 = tpu.matmul %65, %54, %cst_18 {dimension_numbers = #tpu.dot_dimension_numbers<[2], [1], [1], [2], [0, 0, 0, 1, 1, 2], [0], [0]>} : vector<2x8x8xf32>, vector<2x8x8xf32>, vector<2x8x8xf32> -> vector<2x8x8xf32>
    %67 = tpu.concatenate %21, %36, %51, %66 in 2 : vector<2x8x8xf32>, vector<2x8x8xf32>, vector<2x8x8xf32>, vector<2x8x8xf32> -> vector<2x8x32xf32>
    %68 = vector.shape_cast %67 : vector<2x8x32xf32> to vector<16x32xf32>
    %c0_19 = arith.constant 0 : index
    %c0_20 = arith.constant 0 : index
    %69 = vector.load %arg3[%c0_19, %c0_20] : memref<32x128xf32, #tpu.memory_space<vmem>>, vector<32x128xf32>
    %cst_21 = arith.constant dense<0.000000e+00> : vector<16x128xf32>
    %70 = tpu.matmul %68, %69, %cst_21 {dimension_numbers = #tpu.dot_dimension_numbers<[1], [0], [0], [1], [0, 0, 1, 1], [], []>} : vector<16x32xf32>, vector<32x128xf32>, vector<16x128xf32> -> vector<16x128xf32>
    %c0_22 = arith.constant 0 : index
    %c0_23 = arith.constant 0 : index
    %71 = vector.load %arg4[%c0_22, %c0_23] : memref<16x128xf32, #tpu.memory_space<vmem>>, vector<16x128xf32>
    tpu.vector_store %arg4[%c0_22, %c0_23], %70 {strides = array<i32>} : memref<16x128xf32, #tpu.memory_space<vmem>>, vector<16x128xf32>,
    return
  }
  func.func @transform_0(%arg0: i32) -> (i32, i32) {
    %c0_i32 = arith.constant 0 : i32
    %c0_i32_0 = arith.constant 0 : i32
    return %arg0, %c0_i32 : i32, i32
  }
  func.func @transform_1(%arg0: i32) -> (i32, i32) {
    %c0_i32 = arith.constant 0 : i32
    %c0_i32_0 = arith.constant 0 : i32
    %c0_i32_1 = arith.constant 0 : i32
    return %c0_i32, %c0_i32_0 : i32, i32
  }
  func.func @transform_2(%arg0: i32) -> (i32, i32) {
    %c0_i32 = arith.constant 0 : i32
    %c0_i32_0 = arith.constant 0 : i32
    %c0_i32_1 = arith.constant 0 : i32
    return %c0_i32, %c0_i32_0 : i32, i32
  }
  func.func @transform_3(%arg0: i32) -> (i32, i32) {
    %c0_i32 = arith.constant 0 : i32
    %c0_i32_0 = arith.constant 0 : i32
    return %arg0, %c0_i32 : i32, i32
  }
}

</mosaic_0001>

<bundles_post_ra>
// kernel: tpu_custom_call.1
= control target key start
LH: loop header
LB: loop body
LE: loop exit
PB: predicated region body
PF: predicated region fallthrough
CT: control target
= control target key end

     0   :  { %8 = vsyncpa [#allocation3], 0  ;;  %s1060_s0 = inlined_call_operand.hbm [shape: f32[16,32], index: 0, kind: input, shape index: {}]   ;;  %s1061_s1 = inlined_call_operand.hbm [shape: f32[32,96], index: 1, kind: input, shape index: {}]   ;;  %s1062_s2 = inlined_call_operand.hbm [shape: f32[32,128], index: 2, kind: input, shape index: {}]   ;;  %s1063_s3 = inlined_call_operand.hbm [shape: f32[16,128], index: 3, kind: output, shape index: {}]  }
   0x1   :  { %9 = vsyncpa [#allocation6], 0 }
   0x2   :  { %10 = vsyncpa [#allocation4], 0  ;;  %s28_s14 = sshll.u32 %s1061_s1, 4  ;;  %s895_s15 = smov [#allocation5]   ;;  %s29_s14 = int_to_ptr.hbm [resolvable:$true] %s28_s14 }
   0x3   :  { %s30_s16 = sshll.u32 %s895_s15, 4  ;;  %s15_s19 = sshll.u32 %s1060_s0, 4  ;;  %s31_s16 = int_to_ptr.vmem [resolvable:$true] %s30_s16  ;;  %s16_s19 = int_to_ptr.hbm [resolvable:$true] %s15_s19 }
   0x4   :  { %s896_s20 = smov 128   ;;  %s897_s21 = smov 8  }
   0x5   :  { %36 = dma.hbm_to_vmem [thread:$0]  %s29_s14, 512, %s31_s16, [#allocation6], %s896_s20, %s896_s20, %s897_s21  }
   0x6   :  { %s898_s22 = smov [#allocation2]   ;;  %s41_s1 = sshll.u32 %s1062_s2, 4  ;;  %s42_s1 = int_to_ptr.hbm [resolvable:$true] %s41_s1 }
   0x7   :  { %s17_s23 = sshll.u32 %s898_s22, 4  ;;  %s899_s0 = smov [#allocation7]   ;;  %s18_s23 = int_to_ptr.vmem [resolvable:$true] %s17_s23 }
   0x8   :  { %23 = dma.hbm_to_vmem [thread:$0]  %s16_s19, 256, %s18_s23, [#allocation3], %s896_s20, %s896_s20, %s897_s21  }
   0x9   :  { %s43_s26 = sshll.u32 %s899_s0, 4  ;;  %s44_s26 = int_to_ptr.vmem [resolvable:$true] %s43_s26 }
   0xa   :  { %49 = dma.hbm_to_vmem [thread:$0]  %s42_s1, 512, %s44_s26, [#allocation6], %s896_s20, %s896_s20, %s897_s21  }
   0xb   :  { %889 = dma.done.wait [#allocation3], 256  }
   0xc   :  { %890 = vsyncadd [#allocation3], 4294967040 }
   0xd   :  { %891 = dma.done.wait [#allocation6], 1024  }
   0xe   :  { %892 = vsyncadd [#allocation6], 4294966272  ;;  %v65_v0 = vld [vmem:[#allocation5 + $0x18] sm:$0xff]  ;;  %v64_v1 = vld [vmem:[#allocation5 + $0x10] sm:$0xff]  ;;  %vm68_vm0 = vcmask 261120   ;;  %s900_s2 = smov 88  }
   0xf   :  { %87 = vmatpush.msra.mxu0 %v65_v0  ;;  %v63_v2 = vld [vmem:[#allocation5 + $0x8] sm:$0xff]  ;;  %v62_v3 = vld [vmem:[#allocation5] sm:$0xff]  ;;  %v66_v4 = vld [vmem:[#allocation2] sm:$0xff]  ;;  %s901_s27 = smov 96   ;;  %s902_s28 = smov 80   ;;  %vm101_vm1 = vcmask 64512  }
  0x10   :  { %v67_v5 = vld [vmem:[#allocation2 + $0x8] sm:$0xff]  ;;  %s903_s29 = smov 72   ;;  %s904_s30 = smov 120   ;;  %vm643_vm2 = vcmask 130048   ;;  %vm646_vm3 = vcmask 195584  }
  0x11   :  { %88 = vmatpush.msra.mxu0 %v64_v1  ;;  %s905_s4 = smov 112   ;;  %s906_s5 = smov 104  }
  0x12   :  { %s907_s6 = smov 56   ;;  %s908_s7 = smov 64  }
  0x13   :  { %89 = vmatpush.msra.mxu0 %v63_v2  ;;  %s909_s8 = smov 48   ;;  %s910_s9 = smov 40  }
  0x14   :  { %s911_s10 = smov 16   ;;  %s912_s11 = smov 24  }
  0x15   :  { %90 = vmatpush.msra.mxu0 %v62_v3  ;;  %s913_s12 = smov [#allocation8]   ;;  %s690_s16 = sshll.u32 %s1063_s3, 4  ;;  %s691_s16 = int_to_ptr.hbm [resolvable:$true] %s690_s16 }
  0x16   :  { %704 = vmatmul.msk.f32.vlgmr.msra.gmra.mxu0 %vm68_vm0, %v66_v4  ;;  %s688_s13 = sshll.u32 %s913_s12, 4  ;;  %s689_s13 = int_to_ptr.vmem [resolvable:$true] %s688_s13 }
  0x1e   :  { %705 = vmatmul.msk.f32.gmra.mxu0 %vm68_vm0, %v67_v5 }
  0x93   :  { %v954_v6 = vpop.f32.mrf.mxu0 }
  0x94   :  { %229 = vrot.lane.b32.xlu2 %v954_v6, %s900_s2  ;;  %99 = vrot.lane.b32.xlu0 %v954_v6, %s901_s27 }
  0x9b   :  { %v958_v7 = vpop.f32.mrf.mxu0 }
  0x9c   :  { %359 = vrot.lane.b32.xlu2 %v954_v6, %s902_s28  ;;  %257 = vrot.lane.b32.xlu1 %v958_v7, %s900_s2  ;;  %v756_v32 = vpack.i.bf16 %v958_v7, %v954_v6 }
  0x9d   :  { %127 = vrot.lane.b32.xlu0 %v958_v7, %s901_s27 }
  0xa4   :  { %489 = vrot.lane.b32.xlu2 %v954_v6, %s903_s29  ;;  %255 = vrot.lane.b32.xlu1 %v958_v7, %s904_s30 }
  0xa5   :  { %227 = vrot.lane.b32.xlu0 %v954_v6, %s904_s30 }
  0xac   :  { %385 = vrot.lane.b32.xlu2 %v958_v7, %s905_s4  ;;  %357 = vrot.lane.b32.xlu1 %v954_v6, %s905_s4 }
  0xad   :  { %487 = vrot.lane.b32.xlu0 %v954_v6, %s906_s5 }
  0xb4   :  { %387 = vrot.lane.b32.xlu1 %v958_v7, %s902_s28 }
  0xb5   :  { %517 = vrot.lane.b32.xlu0 %v958_v7, %s903_s29 }
  0xbc   :  { %515 = vrot.lane.b32.xlu1 %v958_v7, %s906_s5 }
  0xee   :  { %v230_v8 = vpop.permute.xlu2 %229 }
  0xf6   :  { %v360_v10 = vpop.permute.xlu2 %359 }
  0xfe   :  { %v490_v14 = vpop.permute.xlu2 %489 }
 0x106   :  { %v100_v9 = vpop.permute.xlu0 %99  ;;  %v386_v20 = vpop.permute.xlu2 %385 }
 0x107   :  { %706 = vmatpush.xpose.msk.msra.mxu1 %vm101_vm1, %v100_v9 }
 0x10a   :  { %707 = vmatmul.msk.f32.vlgmr.msra.gmra.mxu1 %vm101_vm1, %v954_v6 }
 0x10b   :  { %712 = vmatpush.xpose.msk.msrb.mxu1 %vm101_vm1, %v230_v8 }
 0x10e   :  { %v258_v11 = vpop.permute.xlu1 %257 }
 0x10f   :  { %v128_v12 = vpop.permute.xlu0 %127  ;;  %714 = vmatpush.xpose.msk.msra.mxu2 %vm101_vm1, %v258_v11 }
 0x110   :  { %708 = vmatpush.xpose.msk.msrb.mxu0 %vm101_vm1, %v128_v12 }
 0x113   :  { %718 = vmatpush.xpose.msk.msrb.mxu2 %vm101_vm1, %v360_v10  ;;  %709 = vmatmul.msk.f32.vlgmr.msrb.gmra.mxu0 %vm101_vm1, %v958_v7 }
 0x116   :  { %v256_v13 = vpop.permute.xlu1 %255 }
 0x117   :  { %v228_v15 = vpop.permute.xlu0 %227  ;;  %715 = vmatmul.msk.f32.vlgmr.msra.gmra.mxu2 %vm101_vm1, %v256_v13 }
 0x118   :  { %713 = vmatmul.msk.f32.vlgmr.msrb.gmra.mxu1 %vm101_vm1, %v228_v15  ;;  %724 = vmatpush.xpose.msk.msra.mxu2 %vm101_vm1, %v490_v14 }
 0x11e   :  { %v358_v16 = vpop.permute.xlu1 %357 }
 0x11f   :  { %v488_v17 = vpop.permute.xlu0 %487  ;;  %719 = vmatmul.msk.f32.vlgmr.msrb.gmra.mxu2 %vm101_vm1, %v358_v16 }
 0x126   :  { %v388_v18 = vpop.permute.xlu1 %387 }
 0x127   :  { %v518_v19 = vpop.permute.xlu0 %517  ;;  %720 = vmatpush.xpose.msk.msra.mxu0 %vm101_vm1, %v388_v18  ;;  %725 = vmatmul.msk.f32.vlgmr.msra.gmra.mxu2 %vm101_vm1, %v488_v17 }
 0x12a   :  { %721 = vmatmul.msk.f32.vlgmr.msra.gmra.mxu0 %vm101_vm1, %v386_v20 }
 0x12b   :  { %726 = vmatpush.xpose.msk.msrb.mxu0 %vm101_vm1, %v518_v19 }
 0x12e   :  { %v516_v21 = vpop.permute.xlu1 %515 }
 0x132   :  { %727 = vmatmul.msk.f32.vlgmr.msrb.gmra.mxu0 %vm101_vm1, %v516_v21 }
 0x187   :  { %v123_v22 = vpop.f32.mrf.mxu1 }
 0x188   :  { %v153_v23 = vsel %vm101_vm1, %v123_v22, -inf }
 0x189   :  { %154 = vmax.xlane.f32.xlu2 %v153_v23 }
 0x190   :  { %v150_v24 = vpop.f32.mrf.mxu0 }
 0x191   :  { %v156_v25 = vsel %vm101_vm1, %v150_v24, -inf }
 0x192   :  { %157 = vmax.xlane.f32.xlu0 %v156_v25 }
 0x195   :  { %v992_v26 = vpop.f32.mrf.mxu1 }
 0x196   :  { %v283_v27 = vsel %vm101_vm1, %v992_v26, -inf }
 0x197   :  { %284 = vmax.xlane.f32.xlu1 %v283_v27 }
 0x19a   :  { %v280_v28 = vpop.f32.mrf.mxu2 }
 0x19b   :  { %v286_v29 = vsel %vm101_vm1, %v280_v28, -inf }
 0x19c   :  { %287 = vmax.xlane.f32.xlu2 %v286_v29 }
 0x1a2   :  { %v382_v30 = vpop.f32.mrf.mxu2 }
 0x1a3   :  { %v413_v31 = vsel %vm101_vm1, %v382_v30, -inf }
 0x1a4   :  { %414 = vmax.xlane.f32.xlu2 %v413_v31 }
 0x1a6   :  { %757 = vrot.lane.b32.xlu0 %v756_v32, %s907_s6 }
 0x1a7   :  { %v410_v33 = vpop.f32.mrf.mxu0 }
 0x1a8   :  { %v416_v34 = vsel %vm101_vm1, %v410_v33, -inf }
 0x1a9   :  { %417 = vmax.xlane.f32.xlu1 %v416_v34 }
 0x1aa   :  { %v512_v35 = vpop.f32.mrf.mxu2 }
 0x1ab   :  { %v543_v36 = vsel %vm101_vm1, %v512_v35, -inf }
 0x1af   :  { %v1002_v37 = vpop.f32.mrf.mxu0 }
 0x1b0   :  { %v546_v38 = vsel %vm101_vm1, %v1002_v37, -inf }
 0x1bc   :  { %752 = vrot.lane.b32.xlu2 %v756_v32, %s908_s7 }
 0x1d0   :  { %544 = vmax.xlane.f32.xlu0 %v543_v36 }
 0x1e5   :  { %547 = vmax.xlane.f32.xlu2 %v546_v38 }
 0x1fc   :  { %v155_v39 = vpop.xlane.xlu2 %154 }
 0x1fd   :  { %v159_v40 = vsub.f32 %v123_v22, %v155_v39  ;;  %435 = vrot.lane.b32.xlu2 %v954_v6, %s909_s8 }
 0x1ff   :  { %v161_v41 = vmul.f32 1.442695, %v159_v40 }
 0x201   :  { %761 = vpow2.f32 %v161_v41 }
 0x205   :  { %v158_v42 = vpop.xlane.xlu0 %157 }
 0x206   :  { %v160_v43 = vsub.f32 %v150_v24, %v158_v42 }
 0x207   :  { %v1008_v44 = vpop.eup %761 }
 0x208   :  { %v163_v45 = vmul.f32 1.442695, %v160_v43  ;;  %v165_v46 = vsel %vm101_vm1, %v1008_v44, 0.0 }
 0x209   :  { %166 = vadd.xlane.f32.xlu0 %v165_v46 }
 0x20a   :  { %763 = vpow2.f32 %v163_v45  ;;  %v285_v52 = vpop.xlane.xlu1 %284 }
 0x20f   :  { %v288_v47 = vpop.xlane.xlu2 %287 }
 0x210   :  { %v1012_v48 = vpop.eup %763  ;;  %v290_v49 = vsub.f32 %v280_v28, %v288_v47 }
 0x211   :  { %v168_v50 = vsel %vm101_vm1, %v1012_v48, 0.0 }
 0x212   :  { %v293_v51 = vmul.f32 1.442695, %v290_v49  ;;  %169 = vadd.xlane.f32.xlu1 %v168_v50 }
 0x214   :  { %765 = vpow2.f32 %v293_v51 }
 0x217   :  { %v415_v53 = vpop.xlane.xlu2 %414 }
 0x218   :  { %v758_v54 = vpop.permute.xlu0 %757  ;;  %v419_v60 = vsub.f32 %v382_v30, %v415_v53 }
 0x219   :  { %v760_v55 = vunpack.i.h.bf16 %v758_v54  ;;  %v759_v24 = vunpack.i.l.bf16 %v758_v54 }
 0x21a   :  { %v1016_v56 = vpop.eup %765  ;;  %v421_v1 = vmul.f32 1.442695, %v419_v60  ;;  %v649_v60 = vld [vmem:[#allocation7] sm:$0xff] }
 0x21b   :  { %352 = vmatpush.msra.mxu1 %v760_v55  ;;  %v298_v57 = vsel %vm101_vm1, %v1016_v56, 0.0 }
 0x21c   :  { %v418_v58 = vpop.xlane.xlu1 %417  ;;  %299 = vadd.xlane.f32.xlu1 %v298_v57  ;;  %v652_v57 = vld [vmem:[#allocation7 + $0x18] sm:$0xff] }
 0x21d   :  { %v420_v59 = vsub.f32 %v410_v33, %v418_v58  ;;  %565 = vrot.lane.b32.xlu0 %v954_v6, %s910_s9  ;;  %v289_v6 = vsub.f32 %v992_v26, %v285_v52  ;;  %v651_v58 = vld [vmem:[#allocation7 + $0x10] sm:$0xff]  ;;  %671 = vmatpush.msrb.mxu2 %v652_v57 }
 0x21f   :  { %v423_v61 = vmul.f32 1.442695, %v420_v59  ;;  %v753_v62 = vpop.permute.xlu2 %752  ;;  %v291_v8 = vmul.f32 1.442695, %v289_v6  ;;  %v650_v59 = vld [vmem:[#allocation7 + $0x8] sm:$0xff]  ;;  %672 = vmatpush.msrb.mxu2 %v651_v58 }
 0x220   :  { %v754_v63 = vunpack.i.l.bf16 %v753_v62  ;;  %v755_v0 = vunpack.i.h.bf16 %v753_v62 }
 0x221   :  { %767 = vpow2.f32 %v423_v61  ;;  %673 = vmatpush.msrb.mxu2 %v650_v59 }
 0x222   :  { %196 = vmatpush.msra.mxu3 %v754_v63  ;;  %769 = vpow2.f32 %v421_v1 }
 0x223   :  { %771 = vpow2.f32 %v291_v8  ;;  %674 = vmatpush.msrb.mxu2 %v649_v60 }
 0x224   :  { %222 = vmatpush.msrb.mxu3 %v755_v0 }
 0x227   :  { %v1022_v2 = vpop.eup %767 }
 0x228   :  { %v428_v3 = vsel %vm101_vm1, %v1022_v2, 0.0  ;;  %v770_v4 = vpop.eup %769 }
 0x229   :  { %429 = vadd.xlane.f32.xlu1 %v428_v3  ;;  %v425_v5 = vsel %vm101_vm1, %v770_v4, 0.0  ;;  %v772_v9 = vpop.eup %771 }
 0x22a   :  { %v295_v13 = vsel %vm101_vm1, %v772_v9, 0.0 }
 0x231   :  { %426 = vadd.xlane.f32.xlu1 %v425_v5 }
 0x243   :  { %v545_v10 = vpop.xlane.xlu0 %544 }
 0x244   :  { %v549_v11 = vsub.f32 %v512_v35, %v545_v10 }
 0x246   :  { %v551_v12 = vmul.f32 1.442695, %v549_v11 }
 0x247   :  { %296 = vadd.xlane.f32.xlu0 %v295_v13 }
 0x248   :  { %773 = vpow2.f32 %v551_v12 }
 0x24e   :  { %v774_v14 = vpop.eup %773 }
 0x24f   :  { %v555_v15 = vsel %vm101_vm1, %v774_v14, 0.0 }
 0x250   :  { %556 = vadd.xlane.f32.xlu1 %v555_v15 }
 0x258   :  { %v548_v16 = vpop.xlane.xlu2 %547 }
 0x259   :  { %v550_v17 = vsub.f32 %v1002_v37, %v548_v16 }
 0x25b   :  { %v553_v18 = vmul.f32 1.442695, %v550_v17  ;;  %591 = vrot.lane.b32.xlu0 %v958_v7, %s910_s9 }
 0x25d   :  { %775 = vpow2.f32 %v553_v18 }
 0x260   :  { %v436_v28 = vpop.permute.xlu2 %435 }
 0x263   :  { %v776_v19 = vpop.eup %775 }
 0x264   :  { %v558_v20 = vsel %vm101_vm1, %v776_v19, 0.0 }
 0x265   :  { %559 = vadd.xlane.f32.xlu2 %v558_v20 }
 0x269   :  { %461 = vrot.lane.b32.xlu1 %v958_v7, %s909_s8 }
 0x27c   :  { %v167_v21 = vpop.xlane.xlu0 %166 }
 0x27d   :  { %777 = vrcp.f32 %v167_v21 }
 0x283   :  { %v778_v22 = vpop.eup %777 }
 0x284   :  { %v173_v23 = vmul.f32 %v778_v22, %v1008_v44 }
 0x285   :  { %v170_v25 = vpop.xlane.xlu1 %169 }
 0x286   :  { %779 = vrcp.f32 %v170_v25  ;;  %710 = vmatmul.msk.f32.vlgmr.msra.gmra.mxu3 %vm101_vm1, %v173_v23 }
 0x287   :  { %326 = vmatpush.msra.mxu3 %v759_v24 }
 0x28c   :  { %v780_v26 = vpop.eup %779 }
 0x28d   :  { %v174_v27 = vmul.f32 %v780_v26, %v1012_v48 }
 0x28f   :  { %711 = vmatmul.msk.f32.vlgmr.msrb.gmra.mxu3 %vm101_vm1, %v174_v27  ;;  %v300_v29 = vpop.xlane.xlu1 %299  ;;  %v566_v31 = vpop.permute.xlu0 %565 }
 0x290   :  { %456 = vmatpush.msrb.mxu3 %v436_v28  ;;  %781 = vrcp.f32 %v300_v29 }
 0x296   :  { %v782_v7 = vpop.eup %781 }
 0x297   :  { %v304_v30 = vmul.f32 %v782_v7, %v1016_v56 }
 0x299   :  { %717 = vmatmul.msk.f32.vlgmr.msra.gmra.mxu1 %vm101_vm1, %v304_v30 }
 0x29c   :  { %v430_v32 = vpop.xlane.xlu1 %429 }
 0x2a4   :  { %v427_v34 = vpop.xlane.xlu1 %426 }
 0x2ba   :  { %v297_v33 = vpop.xlane.xlu0 %296 }
 0x2bb   :  { %783 = vrcp.f32 %v297_v33 }
 0x2bc   :  { %785 = vrcp.f32 %v427_v34 }
 0x2c1   :  { %v784_v35 = vpop.eup %783 }
 0x2c2   :  { %v303_v36 = vmul.f32 %v784_v35, %v772_v9  ;;  %v786_v38 = vpop.eup %785 }
 0x2c3   :  { %v557_v37 = vpop.xlane.xlu1 %556  ;;  %v433_v39 = vmul.f32 %v786_v38, %v770_v4 }
 0x2c4   :  { %716 = vmatmul.msk.f32.vlgmr.msra.gmra.mxu3 %vm101_vm1, %v303_v36  ;;  %787 = vrcp.f32 %v557_v37 }
 0x2c5   :  { %586 = vmatpush.msra.mxu3 %v566_v31  ;;  %789 = vrcp.f32 %v430_v32 }
 0x2ca   :  { %v788_v40 = vpop.eup %787 }
 0x2cb   :  { %v563_v41 = vmul.f32 %v788_v40, %v774_v14  ;;  %v790_v42 = vpop.eup %789 }
 0x2cc   :  { %722 = vmatmul.msk.f32.vlgmr.msrb.gmra.mxu3 %vm101_vm1, %v433_v39  ;;  %v434_v44 = vmul.f32 %v790_v42, %v1022_v2 }
 0x2cd   :  { %v592_v46 = vpop.permute.xlu0 %591 }
 0x2d4   :  { %728 = vmatmul.msk.f32.vlgmr.msra.gmra.mxu3 %vm101_vm1, %v563_v41 }
 0x2d8   :  { %v560_v43 = vpop.xlane.xlu2 %559 }
 0x2d9   :  { %791 = vrcp.f32 %v560_v43 }
 0x2db   :  { %v462_v45 = vpop.permute.xlu1 %461 }
 0x2dc   :  { %482 = vmatpush.msrb.mxu1 %v462_v45 }
 0x2dd   :  { %723 = vmatmul.msk.f32.vlgmr.msrb.gmra.mxu1 %vm101_vm1, %v434_v44 }
 0x2de   :  { %612 = vmatpush.msra.mxu1 %v592_v46 }
 0x2df   :  { %v792_v47 = vpop.eup %791 }
 0x2e0   :  { %v564_v48 = vmul.f32 %v792_v47, %v776_v19 }
 0x2e5   :  { %729 = vmatmul.msk.f32.vlgmr.msra.gmra.mxu1 %vm101_vm1, %v564_v48 }
 0x309   :  { %v198_v49 = vpop.f32.mrf.mxu3 }
 0x312   :  { %v224_v50 = vpop.f32.mrf.mxu3 }
 0x316   :  { %v354_v53 = vpop.f32.mrf.mxu1 }
 0x347   :  { %v328_v51 = vpop.f32.mrf.mxu3 }
 0x348   :  { %619 = vrot.lane.b32.xlu0 %v328_v51, %s897_s21 }
 0x34f   :  { %v458_v52 = vpop.f32.mrf.mxu3 }
 0x350   :  { %627 = vrot.lane.b32.xlu0 %v458_v52, %s911_s10 }
 0x357   :  { %v588_v54 = vpop.f32.mrf.mxu3 }
 0x358   :  { %621 = vrot.lane.b32.xlu0 %v354_v53, %s897_s21  ;;  %635 = vrot.lane.b32.xlu1 %v588_v54, %s912_s11 }
 0x35a   :  { %v484_v55 = vpop.f32.mrf.mxu1 }
 0x360   :  { %629 = vrot.lane.b32.xlu1 %v484_v55, %s911_s10 }
 0x362   :  { %v614_v56 = vpop.f32.mrf.mxu1 }
 0x363   :  { %637 = vrot.lane.b32.xlu0 %v614_v56, %s912_s11 }
 0x3ba   :  { %v620_v61 = vpop.permute.xlu0 %619 }
 0x3bb   :  { %v641_v63 = vsel %vm101_vm1, %v198_v49, %v620_v61 }
 0x3c2   :  { %v628_v62 = vpop.permute.xlu0 %627 }
 0x3c3   :  { %v644_v0 = vsel %vm643_vm2, %v641_v63, %v628_v62 }
 0x3ca   :  { %v636_v1 = vpop.permute.xlu1 %635  ;;  %v622_v3 = vpop.permute.xlu0 %621 }
 0x3cb   :  { %v647_v2 = vsel %vm646_vm3, %v644_v0, %v636_v1  ;;  %v642_v4 = vsel %vm101_vm1, %v224_v50, %v622_v3 }
 0x3cc   :  { %730 = vmatmul.msk.f32.vlgmr.msrb.gmra.mxu2 %vm68_vm0, %v647_v2 }
 0x3d2   :  { %v630_v5 = vpop.permute.xlu1 %629 }
 0x3d3   :  { %v645_v6 = vsel %vm643_vm2, %v642_v4, %v630_v5 }
 0x3d5   :  { %v638_v8 = vpop.permute.xlu0 %637 }
 0x3d6   :  { %v648_v9 = vsel %vm646_vm3, %v645_v6, %v638_v8 }
 0x3d7   :  { %731 = vmatmul.msk.f32.gmra.mxu2 %vm68_vm0, %v648_v9 }
 0x44f   :  { %v676_v10 = vpop.f32.mrf.mxu2 }
 0x450   :  { %682 = vst [vmem:[#allocation8] sm:$0xff] %v676_v10 }
 0x45a   :  { %v679_v11 = vpop.f32.mrf.mxu2 }
 0x45b   :  { %683 = vst [vmem:[#allocation8 + $0x8] sm:$0xff] %v679_v11 }
 0x45c   :  { %696 = dma.vmem_to_hbm [thread:$0]  %s689_s13, 256, %s691_s16, [#allocation4], %s896_s20, %s896_s20, %s897_s21  }
 0x45d   :  { %893 = dma.done.wait [#allocation4], 256  }
 0x45e   :  { %894 = vsyncadd [#allocation4], 4294967040 }
 0x45f   :  { %701 = vsyncpa [#allocation3], 1 }
 0x460   :  { %702 = vsyncpa [#allocation6], 1 }
 0x461   :  { %703 = vsyncpa [#allocation4], 1 }

</bundles_post_ra>
